<compile_context>
chip_gen: v7x
topology: tpu7x:2x2x1
jax: 0.10.0
libtpu: 0.0.40
codegen_flags: <defaults>
</compile_context>

<pallas_src>
import jax
import jax.numpy as jnp
from jax.experimental import pallas as pl
from jax.experimental.pallas import tpu as pltpu

LN_EPS = 1e-5  # nn.LayerNorm default


# --------------------------------------------------------------------------- #
# Kernels
# --------------------------------------------------------------------------- #
def _resident_kernel(x_ref, w_ref, b_ref, o_ref):
    # Resident-weight path: W' = (D, D) stays in VMEM, 1-D grid over row tiles.
    # x_ref: (TR, D)  w_ref: (D, D)  b_ref: (1, D)  o_ref: (TR, D)
    x = x_ref[...].astype(jnp.float32)
    mean = jnp.mean(x, axis=-1, keepdims=True)
    xc = x - mean
    var = jnp.mean(xc * xc, axis=-1, keepdims=True)     # biased, like nn.LayerNorm
    inv = jax.lax.rsqrt(var + LN_EPS)
    normed = (xc * inv).astype(w_ref.dtype)
    y = jnp.dot(normed, w_ref[...], preferred_element_type=jnp.float32)
    o_ref[...] = (y + b_ref[...].astype(jnp.float32)).astype(o_ref.dtype)


def _streamed_kernel(x_ref, w_ref, b_ref, o_ref, normed_ref):
    # Weight-streaming path: 2-D grid (row tiles, N tiles). LN is computed once
    # per row tile (j == 0) into a VMEM scratch and reused for every N tile.
    # x_ref: (TR, D)  w_ref: (D, TN)  b_ref: (1, TN)  o_ref: (TR, TN)
    @pl.when(pl.program_id(1) == 0)
    def _():
        x = x_ref[...].astype(jnp.float32)
        mean = jnp.mean(x, axis=-1, keepdims=True)
        xc = x - mean
        var = jnp.mean(xc * xc, axis=-1, keepdims=True)
        inv = jax.lax.rsqrt(var + LN_EPS)
        normed_ref[...] = (xc * inv).astype(normed_ref.dtype)

    y = jnp.dot(normed_ref[...], w_ref[...], preferred_element_type=jnp.float32)
    o_ref[...] = (y + b_ref[...].astype(jnp.float32)).astype(o_ref.dtype)


# --------------------------------------------------------------------------- #
# Tiling / VMEM heuristics
# --------------------------------------------------------------------------- #
def _round_up(x, m):
    return ((x + m - 1) // m) * m


def _vmem_budget_bytes():
    """Generation-aware usable VMEM budget (leave headroom for Mosaic scratch)."""
    phys = None
    try:
        info = pltpu.get_tpu_info()
        phys = getattr(info, "vmem_capacity_bytes", None)
    except Exception:
        phys = None
    if phys is None:
        phys = 64 << 20                      # conservative default
    if phys >= (128 << 20):
        return 104 << 20                     # v5e / v6e: 128 MiB physical
    return min(phys - (8 << 20), 56 << 20)   # v7x: 64 MiB physical


def _vmem_need(rt, nt, D, n_tiles, itm_x, itm_c):
    if n_tiles == 1:
        x_bufs, w_bufs, scratch = 2, 1, 0
    else:
        x_bufs, w_bufs, scratch = 3, 2, rt * D * itm_c   # Buffered(3) x + normed scratch
    return (x_bufs * rt * D * itm_x          # x blocks
            + 2 * rt * nt * itm_x            # out blocks
            + w_bufs * D * nt * itm_c        # folded weight
            + 2 * nt * 4                     # folded bias (f32)
            + scratch
            + rt * D * 4)                    # f32 LayerNorm working set


def _row_candidates(R, row_align, row_tile_req):
    if row_tile_req is not None:
        cap, start = R, int(row_tile_req)
    else:
        cap, start = R, 1024
        if R > row_align:
            # Guarantee >= 2 row tiles so the 'parallel' axis can feed both
            # v7x TensorCores (no effect on v5e/v6e correctness/perf).
            cap = min(R, max(row_align, _round_up(pl.cdiv(R, 2), row_align)))
    rt = max(row_align, min(_round_up(start, row_align), _round_up(cap, row_align)))
    cands = []
    while True:
        c = min(rt, R)
        if not cands or c != cands[-1]:
            cands.append(c)
        if rt <= row_align:
            break
        nxt = max(row_align, _round_up(rt // 2, row_align))
        if nxt >= rt:
            break
        rt = nxt
    return cands


def _select_tiling(R, D, itm_x, itm_c, budget, row_tile_req, n_tile_req):
    row_align = 16 if itm_x < 4 else 8

    if n_tile_req is not None:
        n_cands = [int(n_tile_req)]
    else:
        # Prefer a fully resident weight; then 256-multiple N tiles (MXU width
        # on v6e/v7x); 128 only as a last resort (fine on v5e's 128-wide MXU).
        n_cands = [D]
        for cand in (4096, 2048, 1024, 512, 256, 128):
            if cand < D and D % cand == 0:
                n_cands.append(cand)

    row_cands = _row_candidates(R, row_align, row_tile_req)

    fallback = None
    for nt in n_cands:
        n_tiles = pl.cdiv(D, nt)
        for rt in row_cands:
            need = _vmem_need(rt, nt, D, n_tiles, itm_x, itm_c)
            if need <= budget:
                return rt, nt, n_tiles, need
            if fallback is None or need < fallback[3]:
                fallback = (rt, nt, n_tiles, need)
    return fallback


# --------------------------------------------------------------------------- #
# Wrapper
# --------------------------------------------------------------------------- #
def pre_layer_norm(x, gamma, beta, w, b, *, row_tile=None, n_tile=None,
                   matmul_dtype=None):
    """x: (B, S, D) -> fn(LayerNorm(x)) with fn = Linear(D, D) (x @ w + b)."""
    B, S, D = x.shape
    R = B * S
    x2 = x.reshape(R, D)

    # Fold LayerNorm affine params into the linear layer (algebraically exact):
    #   fn(LN(x)) = x_hat @ (gamma[:, None] * W) + (beta @ W + b)
    # NOTE: input-independent — hoist to parameter-prep time in a real model.
    w_f32 = w.astype(jnp.float32)
    w_fold = gamma.reshape(D, 1).astype(jnp.float32) * w_f32                     # (D, D)
    b_fold = (beta.reshape(1, D).astype(jnp.float32) @ w_f32
              + b.reshape(1, D).astype(jnp.float32))                             # (1, D)

    # Matmul operand dtype: bf16 MXU path when the model is bf16 (or opted in);
    # LayerNorm statistics are computed in f32 in all cases.
    if matmul_dtype is not None:
        compute_dtype = jnp.dtype(matmul_dtype)
    elif x.dtype == jnp.bfloat16:
        compute_dtype = jnp.dtype(jnp.bfloat16)
    else:
        compute_dtype = jnp.dtype(jnp.float32)
    w_fold = w_fold.astype(compute_dtype)

    itm_x = jnp.dtype(x.dtype).itemsize
    itm_c = compute_dtype.itemsize

    budget = _vmem_budget_bytes()
    rt, nt, n_tiles, need = _select_tiling(R, D, itm_x, itm_c, budget,
                                           row_tile, n_tile)
    grid_rows = pl.cdiv(R, rt)
    vmem_limit = int(min(max(need + (4 << 20), 32 << 20), budget))

    cost = pl.CostEstimate(
        flops=2 * R * D * D + 8 * R * D,
        transcendentals=R,
        bytes_accessed=2 * R * D * itm_x + D * D * itm_c,
    )

    if n_tiles == 1:
        # Resident-weight path: weight/bias are grid-constant -> single buffer.
        out = pl.pallas_call(
            _resident_kernel,
            out_shape=jax.ShapeDtypeStruct((R, D), x.dtype),
            grid_spec=pltpu.PrefetchScalarGridSpec(
                num_scalar_prefetch=0,
                grid=(grid_rows,),
                in_specs=[
                    pl.BlockSpec((rt, D), lambda i: (i, 0)),                     # x rows
                    pl.BlockSpec((D, D), lambda i: (0, 0),
                                 pipeline_mode=pl.Buffered(1)),                  # W'
                    pl.BlockSpec((1, D), lambda i: (0, 0),
                                 pipeline_mode=pl.Buffered(1)),                  # b'
                ],
                out_specs=pl.BlockSpec((rt, D), lambda i: (i, 0)),
            ),
            compiler_params=pltpu.CompilerParams(
                dimension_semantics=("parallel",),
                vmem_limit_bytes=vmem_limit,
            ),
            cost_estimate=cost,
        )(x2, w_fold, b_fold)
    else:
        # Weight-streaming path: deepen x pipelining so its DMA is not exposed
        # at row-tile boundaries (x's block index only changes on the row axis).
        x_mode = pl.Buffered(1) if grid_rows == 1 else pl.Buffered(3)
        out = pl.pallas_call(
            _streamed_kernel,
            out_shape=jax.ShapeDtypeStruct((R, D), x.dtype),
            grid_spec=pltpu.PrefetchScalarGridSpec(
                num_scalar_prefetch=0,
                grid=(grid_rows, n_tiles),
                in_specs=[
                    pl.BlockSpec((rt, D), lambda i, j: (i, 0),
                                 pipeline_mode=x_mode),                          # x rows
                    pl.BlockSpec((D, nt), lambda i, j: (0, j)),                  # W' tile
                    pl.BlockSpec((1, nt), lambda i, j: (0, j)),                  # b' tile
                ],
                out_specs=pl.BlockSpec((rt, nt), lambda i, j: (i, j)),
                scratch_shapes=[pltpu.VMEM((rt, D), compute_dtype)],
            ),
            compiler_params=pltpu.CompilerParams(
                dimension_semantics=("parallel", "arbitrary"),
                vmem_limit_bytes=vmem_limit,
            ),
            cost_estimate=cost,
        )(x2, w_fold, b_fold)

    return out.reshape(B, S, D)


# --------------------------------------------------------------------------- #
# Reference + test
# --------------------------------------------------------------------------- #
def _reference(x, gamma, beta, w, b):
    xf = x.astype(jnp.float32)
    mean = jnp.mean(xf, axis=-1, keepdims=True)
    var = jnp.mean((xf - mean) ** 2, axis=-1, keepdims=True)
    normed = (xf - mean) * jax.lax.rsqrt(var + LN_EPS) * gamma.reshape(-1) + beta.reshape(-1)
    return (normed @ w.astype(jnp.float32) + b.reshape(-1)).astype(x.dtype)


if __name__ == "__main__":
    key = jax.random.PRNGKey(0)
    keys = jax.random.split(key, 8)

    # --- Case 1: small shape -> resident-weight path (full-D weight in VMEM) ---
    B, S, D = 2, 8, 32
    x = jax.random.normal(keys[0], (B, S, D), dtype=jnp.float32)
    gamma = jnp.ones((1, D), dtype=jnp.float32)     # PyTorch default LN init
    beta = jnp.zeros((1, D), dtype=jnp.float32)
    # TODO(synk): `fn` is arbitrary in the PyTorch module; a dense projection
    # Linear(D, D) is fused here as the representative wrapped sub-module.
    w = (jax.random.normal(keys[1], (D, D), dtype=jnp.float32) / jnp.sqrt(D))
    b = jax.random.normal(keys[2], (1, D), dtype=jnp.float32) * 0.01

    y_ref = _reference(x, gamma, beta, w, b)

    y = pre_layer_norm(x, gamma, beta, w, b)                      # auto tiling
    jax.block_until_ready(y)
    assert y.shape == (B, S, D)
    assert jnp.allclose(y, y_ref, atol=1e-4, rtol=1e-4), "mismatch (resident, auto)"

    y2 = pre_layer_norm(x, gamma, beta, w, b, row_tile=8)         # explicit row grid
    jax.block_until_ready(y2)
    assert jnp.allclose(y2, y_ref, atol=1e-4, rtol=1e-4), "mismatch (resident, tiled rows)"

    # --- Case 2: D=256 with forced N tiling -> weight-streaming 2-D grid path ---
    B2, S2, D2 = 2, 8, 256
    x2 = jax.random.normal(keys[3], (B2, S2, D2), dtype=jnp.float32)
    gamma2 = 1.0 + 0.1 * jax.random.normal(keys[4], (1, D2), dtype=jnp.float32)
    beta2 = 0.1 * jax.random.normal(keys[5], (1, D2), dtype=jnp.float32)
    w2 = (jax.random.normal(keys[6], (D2, D2), dtype=jnp.float32) / jnp.sqrt(D2))
    b2 = jax.random.normal(keys[7], (1, D2), dtype=jnp.float32) * 0.01

    y3_ref = _reference(x2, gamma2, beta2, w2, b2)
    y3 = pre_layer_norm(x2, gamma2, beta2, w2, b2, row_tile=8, n_tile=128)
    jax.block_until_ready(y3)
    assert y3.shape == (B2, S2, D2)
    assert jnp.allclose(y3, y3_ref, atol=2e-4, rtol=2e-4), "mismatch (streamed weight)"

    print("KERNEL_OK")
</pallas_src>

<mosaic_0001>
module attributes {stable_mosaic.version = 11 : i64} {
  func.func @_resident_kernel(%arg0: i32, %arg1: memref<8x32xf32, #tpu.memory_space<vmem>>, %arg2: memref<32x32xf32, #tpu.memory_space<vmem>>, %arg3: memref<1x32xf32, #tpu.memory_space<vmem>>, %arg4: memref<8x32xf32, #tpu.memory_space<vmem>>) attributes {dimension_semantics = [#tpu.dimension_semantics<parallel>], iteration_bounds = array<i64: 2>, scalar_prefetch = 0 : i64, scratch_operands = 0 : i64, tpu.core_type = #tpu.core_type<tc>, window_params = [{transform_indices = @transform_0, window_bounds = array<i64: 8, 32>}, {pipeline_mode = #tpu.pipeline_mode<synchronous>, transform_indices = @transform_1, window_bounds = array<i64: 32, 32>}, {pipeline_mode = #tpu.pipeline_mode<synchronous>, transform_indices = @transform_2, window_bounds = array<i64: 1, 32>}, {transform_indices = @transform_3, window_bounds = array<i64: 8, 32>}]} {
    %c0 = arith.constant 0 : index
    %c0_0 = arith.constant 0 : index
    %0 = vector.load %arg1[%c0, %c0_0] : memref<8x32xf32, #tpu.memory_space<vmem>>, vector<8x32xf32>
    %cst = arith.constant dense<0.000000e+00> : vector<8xf32>
    %1 = vector.multi_reduction <add>, %0, %cst [1] : vector<8x32xf32> to vector<8xf32>
    %2 = vector.shape_cast %1 : vector<8xf32> to vector<8x1xf32>
    %cst_1 = arith.constant 3.200000e+01 : f32
    %3 = vector.broadcast %cst_1 : f32 to vector<8x1xf32>
    %4 = arith.divf %2, %3 : vector<8x1xf32>
    %5 = vector.broadcast %4 : vector<8x1xf32> to vector<8x32xf32>
    %6 = arith.subf %0, %5 : vector<8x32xf32>
    %7 = arith.mulf %6, %6 : vector<8x32xf32>
    %cst_2 = arith.constant dense<0.000000e+00> : vector<8xf32>
    %8 = vector.multi_reduction <add>, %7, %cst_2 [1] : vector<8x32xf32> to vector<8xf32>
    %9 = vector.shape_cast %8 : vector<8xf32> to vector<8x1xf32>
    %cst_3 = arith.constant 3.200000e+01 : f32
    %10 = vector.broadcast %cst_3 : f32 to vector<8x1xf32>
    %11 = arith.divf %9, %10 : vector<8x1xf32>
    %cst_4 = arith.constant 9.99999974E-6 : f32
    %12 = vector.broadcast %cst_4 : f32 to vector<8x1xf32>
    %13 = arith.addf %11, %12 : vector<8x1xf32>
    %14 = math.rsqrt %13 : vector<8x1xf32>
    %15 = vector.broadcast %14 : vector<8x1xf32> to vector<8x32xf32>
    %16 = arith.mulf %6, %15 : vector<8x32xf32>
    %c0_5 = arith.constant 0 : index
    %c0_6 = arith.constant 0 : index
    %17 = vector.load %arg2[%c0_5, %c0_6] : memref<32x32xf32, #tpu.memory_space<vmem>>, vector<32x32xf32>
    %cst_7 = arith.constant dense<0.000000e+00> : vector<8x32xf32>
    %18 = tpu.matmul %16, %17, %cst_7 {dimension_numbers = #tpu.dot_dimension_numbers<[1], [0], [0], [1], [0, 0, 1, 1], [], []>} : vector<8x32xf32>, vector<32x32xf32>, vector<8x32xf32> -> vector<8x32xf32>
    %c0_8 = arith.constant 0 : index
    %c0_9 = arith.constant 0 : index
    %19 = vector.load %arg3[%c0_8, %c0_9] : memref<1x32xf32, #tpu.memory_space<vmem>>, vector<1x32xf32>
    %20 = vector.broadcast %19 : vector<1x32xf32> to vector<8x32xf32>
    %21 = arith.addf %18, %20 : vector<8x32xf32>
    %c0_10 = arith.constant 0 : index
    %c0_11 = arith.constant 0 : index
    %22 = vector.load %arg4[%c0_10, %c0_11] : memref<8x32xf32, #tpu.memory_space<vmem>>, vector<8x32xf32>
    tpu.vector_store %arg4[%c0_10, %c0_11], %21 {strides = array<i32>} : memref<8x32xf32, #tpu.memory_space<vmem>>, vector<8x32xf32>,
    return
  }
  func.func @transform_0(%arg0: i32) -> (i32, i32) {
    %c0_i32 = arith.constant 0 : i32
    %c0_i32_0 = arith.constant 0 : i32
    return %arg0, %c0_i32 : i32, i32
  }
  func.func @transform_1(%arg0: i32) -> (i32, i32) {
    %c0_i32 = arith.constant 0 : i32
    %c0_i32_0 = arith.constant 0 : i32
    %c0_i32_1 = arith.constant 0 : i32
    return %c0_i32, %c0_i32_0 : i32, i32
  }
  func.func @transform_2(%arg0: i32) -> (i32, i32) {
    %c0_i32 = arith.constant 0 : i32
    %c0_i32_0 = arith.constant 0 : i32
    %c0_i32_1 = arith.constant 0 : i32
    return %c0_i32, %c0_i32_0 : i32, i32
  }
  func.func @transform_3(%arg0: i32) -> (i32, i32) {
    %c0_i32 = arith.constant 0 : i32
    %c0_i32_0 = arith.constant 0 : i32
    return %arg0, %c0_i32 : i32, i32
  }
}

</mosaic_0001>

<bundles_post_ra>
// kernel: tpu_custom_call.1
= control target key start
LH: loop header
LB: loop body
LE: loop exit
PB: predicated region body
PF: predicated region fallthrough
CT: control target
= control target key end

     0   :  { %8 = vsyncpa [#allocation3], 0  ;;  %s863_s0 = inlined_call_operand.hbm [shape: f32[16,32], index: 0, kind: input, shape index: {}]   ;;  %s864_s1 = inlined_call_operand.hbm [shape: f32[32,32], index: 1, kind: input, shape index: {}]   ;;  %s865_s2 = inlined_call_operand.vmem [shape: f32[1,32], index: 2, kind: input, shape index: {}]   ;;  %s866_s3 = inlined_call_operand.hbm [shape: f32[16,32], index: 3, kind: output, shape index: {}]  }
   0x1   :  { %10 = vsyncpa [#allocation3 + $0x1], 0 }
   0x2   :  { %11 = vsyncpa [#allocation6], 0 }
   0x3   :  { %12 = vsyncpa [#allocation4], 0 }
   0x4   :  { %14 = vsyncpa [#allocation4 + $0x1], 0  ;;  %s656_s12 = smov 0   ;;  %s658_s13 = smov 0  }
   0x5   :  { %s660_s14 = smov 0   ;;  %s662_s15 = smov 0  }
   0x6 LB: > { %s677_s16 = sadd.s32 4294967295, %s626_s15   ;;  %s396_s17 = sadd.s32 4294967294, %s626_s15   ;;  %s626_s15 = sphi %s662_s15, %s886_s15   ;;  %s622_s14 = sphi %s660_s14, %s885_s14   ;;  %s618_s13 = sphi %s658_s13, %s884_s13   ;;  %s614_s12 = sphi %s656_s12, %s883_s12  }
   0x7   : > { %p40_p0 = scmp.ne.s32.totalorder %s618_s13, %s614_s12  ;;  %p867_p1 = scmp.eq.s32.totalorder %s677_s16, 0 }
   0x8   : > { %p112_p3 = scmp.eq.s32.totalorder %s396_s17, 1  ;;  %p397_p5 = scmp.ge.s32.totalorder %s626_s15, 1 }
   0x9   : > { %p686_p4 = por %p867_p1, %p40_p0  ;;  %p119_p7 = scmp.lt.s32.totalorder %s626_s15, 3 }
   0xa   : > { %p691_p6 = por %p112_p3, %p40_p0  ;;  %s628_s21 = smov [#allocation5]  }
   0xb   : > { %s870_s18 = scalar_select %p686_p4, 1, 0 }
   0xc   : > { %s871_s19 = scalar_select %p691_p6, 1, 0 }
   0xd   : > { %p696_p8 = pnand %p397_p5, %p119_p7  ;;  %s131_s22 = sshll.u32 %s628_s21, 4  ;;  %s700_s22 = int_to_ptr.vmem [resolvable:$true] %s131_s22 }
   0xe   : > { %s712_s24 = sadd.s32 1, %s626_s15   ;;  %s27_s25 = sadd.s32 1, %s622_s14 }
   0xf   : > { %s872_s20 = scalar_select %p696_p8, 1, 0 }
  0x10   : > { %p442_p9 = pneg %p696_p8  ;;  %s24_s26 = ssub.s32 %s626_s15, %s712_s24 }
  0x11   : > { %s498_s29 = scalar_lea.hbm %s864_s1, 512 }
  0x12   : > { %p707_p11 = pnand %p442_p9, %p867_p1  ;;  %p499_p12 = scmp.ne.s32.totalorder %s864_s1, %s498_s29 }
  0x13   : > { %p505_p5 = scmp.lt.u32.totalorder %s498_s29, %s864_s1 }
  0x14   : > { %p500_p13 = pneg %p707_p11 }
  0x16   : > { %p501_p0 = pnand %p500_p13, %p499_p12 }
  0x18   : > { %p502_p3 = pneg %p501_p0 }
  0x1a   : > { %p507_p7 = pnand %p505_p5, %p502_p3 }
  0x1c   : > { %510 = shalt.err (!%p507_p7)
}
  0x1d   : > { %s511_s7 = scalar_lea.vmem %s700_s22, 512  ;;  %p519_p2 = scmp.lt.s32.totalorder %s700_s22, %s700_s22 }
  0x1e   : > { %p512_p9 = scmp.ne.s32.totalorder %s700_s22, %s511_s7  ;;  %p520_p6 = scmp.lt.s32.totalorder %s511_s7, %s511_s7 }
  0x20   : > { %p514_p10 = pnand %p512_p9, %p500_p13  ;;  %p521_p4 = por %p520_p6, %p519_p2 }
  0x22   : > { %p515_p1 = pneg %p514_p10 }
  0x24   : > { %p522_p8 = pnand %p521_p4, %p515_p1 }
  0x26   : > { %525 = shalt.err (!%p522_p8)
}
  0x27   : > { %s629_s8 = smov 128   ;;  %s630_s9 = smov 8  }
  0x28   : > { %445 = dma.hbm_to_vmem [thread:$0]  (!%p707_p11), %s864_s1, 512, %s700_s22, [#allocation6], %s629_s8, %s629_s8, %s630_s9  }
  0x29   : > { %p25_p2 = scmp.eq.s32.totalorder %s24_s26, 0  ;;  %p34_p1 = scmp.ne.s32.totalorder %s622_s14, %s618_s13 }
  0x2a   : > { %p35_p4 = scmp.eq.s32.totalorder %s626_s15, 0  ;;  %p455_p6 = scmp.lt.s32.totalorder %s626_s15, 2 }
  0x2b   : > { %s743_s17 = scalar_select %p25_p2, %s622_s14, %s27_s25  }
  0x2c   : > { %p36_p8 = por %p35_p4, %p34_p1  ;;  %p874_p10 = scmp.eq.s32.totalorder %s677_s16, 1 }
  0x2d   : > { %s148_s27 = sand.u32 1, %s622_s14   ;;  %s401_s28 = sshll.u32 %s626_s15, 7 }
  0x2e   : > { %p747_p12 = por %p874_p10, %p34_p1  ;;  %s400_s29 = sshll.u32 %s148_s27, 3 }
  0x2f   : > { %s756_s4 = scalar_lea.hbm %s863_s0, %s401_s28  ;;  %s152_s22 = scalar_lea.vmem [#allocation2], %s400_s29 }
  0x30   : > { %s159_s25 = sshll.u32 %s152_s22, 4  ;;  %p758_p11 = pnand %p455_p6, %p36_p8  ;;  %s762_s25 = int_to_ptr.vmem [resolvable:$true] %s159_s25 }
  0x31   : > { %s149_s5 = scalar_lea.sflag [#allocation3], %s148_s27  ;;  %s526_s6 = scalar_lea.hbm %s756_s4, 128 }
  0x32   : > { %p527_p13 = scmp.ne.s32.totalorder %s756_s4, %s526_s6  ;;  %p528_p0 = pneg %p758_p11 }
  0x33   : > { %s531_s9 = scalar_lea.hbm %s863_s0, 256  ;;  %p532_p7 = scmp.lt.u32.totalorder %s756_s4, %s863_s0 }
  0x34   : > { %p529_p3 = pnand %p528_p0, %p527_p13  ;;  %p533_p9 = scmp.lt.u32.totalorder %s531_s9, %s526_s6 }
  0x35   : > { %p535_p1 = scmp.lt.u32.totalorder %s526_s6, %s756_s4 }
  0x36   : > { %p530_p5 = pneg %p529_p3  ;;  %p534_p2 = por %p533_p9, %p532_p7 }
  0x38   : > { %p536_p4 = por %p535_p1, %p534_p2 }
  0x3a   : > { %p537_p6 = pnand %p536_p4, %p530_p5 }
  0x3c   : > { %540 = shalt.err (!%p537_p6)
}
  0x3d   : > { %s541_s27 = scalar_lea.vmem %s762_s25, 128  ;;  %s631_s28 = smov [#allocation2]  }
  0x3e   : > { %p542_p8 = scmp.ne.s32.totalorder %s762_s25, %s541_s27  ;;  %s546_s29 = sshll.u32 %s631_s28, 4  ;;  %s547_s29 = int_to_ptr.vmem [resolvable:$false] %s546_s29 }
  0x3f   : > { %s548_s23 = scalar_lea.vmem %s547_s29, 256  ;;  %p549_p3 = scmp.lt.s32.totalorder %s762_s25, %s547_s29 }
  0x40   : > { %p544_p10 = pnand %p542_p8, %p528_p0  ;;  %p550_p7 = scmp.lt.s32.totalorder %s548_s23, %s541_s27 }
  0x42   : > { %p545_p13 = pneg %p544_p10  ;;  %p551_p9 = por %p550_p7, %p549_p3 }
  0x44   : > { %p552_p2 = pnand %p551_p9, %p545_p13 }
  0x46   : > { %555 = shalt.err (!%p552_p2)
}
  0x47   : > { %449 = dma.hbm_to_vmem [thread:$0]  (!%p758_p11), %s756_s4, 128, %s762_s25, %s149_s5  }
  0x48   : > { %p877_p5 = scmp.ne.s32.totalorder %s872_s20, 0 }
  0x49   : > { %s792_s30 = sand.u32 (!%p877_p5), 1, %s618_s13   ;;  %p878_p0 = scmp.ne.s32.totalorder (!%p877_p5), %s870_s18, 0 }
  0x4a   : > { %168 = sbr.rel (%p877_p5) target bundleno = 623 (0x26f), region = 32  ;;  %s403_s22 = sshll.u32 (!%p877_p5), %s792_s30, 3 }
  0x4b   : > { %s171_s6 = scalar_lea.sflag (!%p877_p5), [#allocation3], %s792_s30  ;;  %s174_s7 = scalar_lea.vmem (!%p877_p5), [#allocation2], %s403_s22 }
  0x51   : > { %601 = dma.done.wait (%p878_p0), %s171_s6, 128  }
  0x52   : > { %603 = vsyncadd (%p878_p0), %s171_s6, 4294967168  ;;  %p879_p11 = scmp.eq.s32.totalorder %s677_s16, 0 }
  0x54   : > { %605 = dma.done.wait (%p879_p11), [#allocation6], 512   ;;  %p880_p1 = pmov %p879_p11 }
  0x55   : > { %vm202_vm0 = vcmask 261120   ;;  %v201_v0 = vld [vmem:[%s174_s7] sm:$0xff]  ;;  %v217_v7 = vld [vmem:[#allocation5] sm:$0xff]  ;;  %v218_v8 = vld [vmem:[#allocation5 + $0x8] sm:$0xff]  ;;  %v632_v10 = vmov 0.0|0.0   ;;  %vm633_vm1 = vmmov 0  }
  0x56   : > { %607 = vsyncadd (%p880_p1), [#allocation6], 4294966784  ;;  %v203_v1 = vsel %vm202_vm0, %v201_v0, 0.0  ;;  %v219_v9 = vld [vmem:[#allocation5 + $0x10] sm:$0xff]  ;;  %428 = vmatprep.subr.bf16.mxu0 %v632_v10  ;;  %v429_v11 = vpack.c.bf16 %v218_v8, %v217_v7  ;;  %v220_v12 = vld [vmem:[#allocation5 + $0x18] sm:$0xff]  ;;  %v634_v13 = vmov 0.0  }
  0x57   : > { %204 = vadd.xlane.f32.xlu0 %v203_v1  ;;  %425 = vmatprep.mubr.msk.f32.mxu0 %vm633_vm1, %v634_v13  ;;  %v432_v14 = vpack.c.bf16 %v220_v12, %v219_v9  ;;  %v406_v20 = vld [vmem:[%s865_s2] ss:$0 sm:$0xff]  ;;  %s409_s4 = sshll.u32 %s677_s16, 7  ;;  %s200_s25 = scalar_lea.vmem [#allocation7], %s403_s22 }
  0x58   : > { %430 = vmatpush3.bf16.msra.mxu0 %v429_v11  ;;  %s316_s26 = sshll.u32 %s200_s25, 4  ;;  %s818_s9 = scalar_lea.hbm %s866_s3, %s409_s4  ;;  %s820_s26 = int_to_ptr.vmem [resolvable:$true] %s316_s26 }
  0x59   : > { %431 = vmatprep.subr.bf16.mxu0 %v632_v10  ;;  %s303_s10 = scalar_lea.sflag [#allocation4], %s792_s30  ;;  %s556_s16 = scalar_lea.vmem %s820_s26, 128 }
  0x5a   : > { %p557_p4 = scmp.ne.s32.totalorder %s820_s26, %s556_s16  ;;  %s635_s11 = smov [#allocation7]  }
  0x5b   : > { %s560_s27 = sshll.u32 %s635_s11, 4  ;;  %s561_s27 = int_to_ptr.vmem [resolvable:$false] %s560_s27 }
  0x5c   : > { %433 = vmatpush3.bf16.msra.mxu0 %v432_v14  ;;  %p558_p6 = pnand %p557_p4, %p747_p12  ;;  %s562_s28 = scalar_lea.vmem %s561_s27, 256 }
  0x5d   : > { %p563_p10 = scmp.lt.s32.totalorder %s820_s26, %s561_s27  ;;  %p564_p13 = scmp.lt.s32.totalorder %s562_s28, %s556_s16 }
  0x5e   : > { %p559_p8 = pneg %p558_p6 }
  0x5f   : > { %p565_p3 = por %p564_p13, %p563_p10 }
  0x61   : > { %p566_p7 = pnand %p565_p3, %p559_p8 }
  0xe4   : > { %v205_v2 = vpop.xlane.xlu0 %204 }
  0xe5   : > { %v207_v3 = vmul.f32 0.03125, %v205_v2 }
  0xe7   : > { %v208_v4 = vsub.f32 %v201_v0, %v207_v3 }
  0xe9   : > { %v209_v5 = vmul.f32 %v208_v4, %v208_v4 }
  0xeb   : > { %v210_v6 = vsel %vm202_vm0, %v209_v5, 0.0 }
  0xec   : > { %211 = vadd.xlane.f32.xlu0 %v210_v6 }
 0x179   : > { %v212_v15 = vpop.xlane.xlu0 %211 }
 0x17a   : > { %v213_v16 = vmul.f32 0.03125, %v212_v15 }
 0x17c   : > { %v214_v17 = vadd.f32 1e-05, %v213_v16 }
 0x17e   : > { %496 = vrsqrt.f32 %v214_v17 }
 0x188   : > { %v497_v18 = vpop.eup %496 }
 0x189   : > { %v216_v19 = vmul.f32 %v497_v18, %v208_v4 }
 0x18b   : > { %426 = vmatmul.mubr.msk.f32.vlgmr.msra.gmra.mrb[0].mxu0 %vm202_vm0, %v216_v19 }
 0x25e   : > { %v297_v21 = vpop.f32.mrb[0].mxu0 }
 0x25f   : > { %v298_v22 = vadd.f32 %v406_v20, %v297_v21  ;;  %v427_v23 = vpop.f32.mrb[1].mxu0 }
 0x261   : > { %301 = vst.msk [vmem:[%s200_s25] sm:$0xff] %vm202_vm0, %v298_v22 }
 0x262   : > { %569 = shalt.err (!%p566_p7)
}
 0x263   : > { %s570_s29 = scalar_lea.hbm %s818_s9, 128  ;;  %s574_s22 = scalar_lea.hbm %s866_s3, 256 }
 0x264   : > { %p571_p9 = scmp.ne.s32.totalorder %s818_s9, %s570_s29  ;;  %p575_p0 = scmp.lt.u32.totalorder %s818_s9, %s866_s3 }
 0x265   : > { %p576_p11 = scmp.lt.u32.totalorder %s574_s22, %s570_s29  ;;  %p578_p4 = scmp.lt.u32.totalorder %s570_s29, %s818_s9 }
 0x266   : > { %p572_p2 = pnand %p571_p9, %p747_p12 }
 0x267   : > { %p577_p1 = por %p576_p11, %p575_p0 }
 0x268   : > { %p573_p5 = pneg %p572_p2 }
 0x269   : > { %p579_p6 = por %p578_p4, %p577_p1 }
 0x26b   : > { %p580_p8 = pnand %p579_p6, %p573_p5 }
 0x26d   : > { %583 = shalt.err (!%p580_p8)
}
 0x26e   : > { %440 = dma.vmem_to_hbm [thread:$0]  (%p747_p12), %s820_s26, 128, %s818_s9, %s303_s10  }
 0x26f PF: > { %s328_s18 = sand.u32 1, %s614_s12   ;;  %p881_p10 = scmp.ne.s32.totalorder %s871_s19, 0 }
 0x270   : > { %p882_p13 = scmp.ge.s32.totalorder %s626_s15, 2  ;;  %s329_s20 = scalar_lea.sflag [#allocation4], %s328_s18 }
 0x272   : > { %p451_p3 = pnand %p882_p13, %p881_p10 }
 0x274   : > { %609 = dma.done.wait (!%p451_p3), %s329_s20, 128  }
 0x275   : > { %611 = vsyncadd (!%p451_p3), %s329_s20, 4294967168  ;;  %p17_p7 = scmp.ge.s32.totalorder %s712_s24, 4   ;;  %s883_s12 = smov %s618_s13 }
 0x276   : > { %s884_s13 = smov %s622_s14  ;;  %s885_s14 = smov %s743_s17 }
 0x277   : > { %s886_s15 = smov %s712_s24  ;;  %19 = sbr.rel (!%p17_p7) target bundleno = 6 (0x6), region = 81 }
 0x27e   :  { %334 = vsyncpa [#allocation3], 1 }
 0x27f   :  { %336 = vsyncpa [#allocation3 + $0x1], 1 }
 0x280   :  { %337 = vsyncpa [#allocation6], 1 }
 0x281   :  { %338 = vsyncpa [#allocation4], 1 }
 0x282   :  { %340 = vsyncpa [#allocation4 + $0x1], 1 }

</bundles_post_ra>
